<compile_context>
chip_gen: v6e
topology: v6e:2x2x1
jax: 0.10.0
libtpu: 0.0.40
codegen_flags: <defaults>
</compile_context>

<pallas_src>
import functools

import jax
import jax.numpy as jnp
from jax.experimental import pallas as pl
from jax.experimental.pallas import tpu as pltpu


def _pad1d_kernel(x_ref, o_ref, *, padleft, padright, width):
    # Single store of the data region at its final lane offset; edge lanes are
    # masked vst because padleft is generally not a multiple of 128 (inherent
    # to this layout).  Only the two narrow pad slices get zero stores.
    o_ref[:, padleft:padleft + width] = x_ref[...]
    tb = o_ref.shape[0]
    if padleft > 0:
        o_ref[:, :padleft] = jnp.zeros((tb, padleft), o_ref.dtype)
    if padright > 0:
        o_ref[:, padleft + width:] = jnp.zeros((tb, padright), o_ref.dtype)


def _sublane_multiple(dtype) -> int:
    # Sublane packing multiple: 8 for 4-byte, 16 for 2-byte, 32 for 1-byte.
    itemsize = jnp.dtype(dtype).itemsize
    return max(8, 32 // max(itemsize, 1))


def _block_budget_bytes() -> int:
    # Combined (input + output) bytes per grid step.  BlockSpec double-buffers
    # each operand, so 2x this must stay under the scoped-VMEM default:
    #   v5e (16 MiB scoped):    6 MiB * 2 = 12 MiB
    #   v6e/v7x (32 MiB scoped): 12 MiB * 2 = 24 MiB
    try:
        kind = jax.devices()[0].device_kind.lower()
    except Exception:  # defensive: fall back to the conservative budget
        kind = ""
    if ("v6" in kind) or ("v7" in kind):
        return 12 * 1024 * 1024
    return 6 * 1024 * 1024  # conservative default (v5e and older/unknown)


def pad1d(x, padleft, padright):
    """Equivalent of torch.nn.functional.pad(tensor, pad=(padleft, padright))."""
    # TODO(synk): negative padding (cropping) not implemented.
    assert padleft >= 0 and padright >= 0

    if padleft == 0 and padright == 0:
        return x

    orig_shape = x.shape
    w = orig_shape[-1]
    w_out = w + padleft + padright
    pad_cfg = [(0, 0)] * (x.ndim - 1) + [(padleft, padright)]

    rows = 1
    for d in orig_shape[:-1]:
        rows *= d

    itemsize = jnp.dtype(x.dtype).itemsize
    bytes_per_row = (w + w_out) * itemsize
    sub = _sublane_multiple(x.dtype)
    budget = _block_budget_bytes()

    # Narrow last dim: >80% of every vreg / HBM row is wasted and every store
    # is masked -- a Pallas kernel cannot beat XLA's pad here.  Also bail out
    # for degenerate shapes or when even a minimal (sub x W) block would blow
    # the per-step VMEM budget.
    # TODO(synk): width-tiled (two-axis grid) variant for very wide W.
    if rows == 0 or w == 0 or w_out < 128 or bytes_per_row * sub > budget:
        return jnp.pad(x, pad_cfg)

    x2 = x.reshape(rows, w)  # wrapper reshape = layout plumbing only

    # Row tile: largest sublane-pack multiple under the budget, capped so the
    # grid has >= 2 steps when rows permit (lets v7x's two TensorCores share
    # the "parallel" axis; an extra step costs ~0.35 us elsewhere, negligible).
    tb = max(sub, (budget // bytes_per_row) // sub * sub)
    if rows > sub:
        half_cap = -(-((rows + 1) // 2) // sub) * sub  # ceil(rows/2) -> mult of sub
        tb = min(tb, half_cap)
    tb = min(tb, -(-rows // sub) * sub)
    if tb >= rows:
        tb = rows  # single full-extent block (valid even if rows % sub != 0)
    elif rows % sub == 0 and rows % tb != 0:
        # Prefer a divisor of rows (removes the ragged, masked final grid
        # step) as long as it doesn't shrink the tile by more than ~2x.
        for cand in range(tb, max(sub, tb // 2) - 1, -sub):
            if rows % cand == 0:
                tb = cand
                break

    grid = (pl.cdiv(rows, tb),)

    kernel = functools.partial(
        _pad1d_kernel, padleft=padleft, padright=padright, width=w)

    out = pl.pallas_call(
        kernel,
        out_shape=jax.ShapeDtypeStruct((rows, w_out), x2.dtype),
        grid_spec=pltpu.PrefetchScalarGridSpec(
            num_scalar_prefetch=0,
            grid=grid,
            in_specs=[pl.BlockSpec((tb, w), lambda i: (i, 0))],
            out_specs=pl.BlockSpec((tb, w_out), lambda i: (i, 0)),
        ),
        compiler_params=pltpu.CompilerParams(
            dimension_semantics=("parallel",),
        ),
        cost_estimate=pl.CostEstimate(
            flops=0,
            transcendentals=0,
            bytes_accessed=rows * (w + w_out) * itemsize,
        ),
    )(x2)

    return out.reshape(orig_shape[:-1] + (w_out,))


if __name__ == "__main__":
    key = jax.random.PRNGKey(0)
    padleft, padright = 2, 3

    # Spec-sized small input (w_out = 21 < 128): wrapper dispatches to the
    # jnp.pad fast path where XLA wins for lane-sparse shapes.
    x_small = jax.random.normal(key, (2, 4, 16, 16), dtype=jnp.float32)
    y_small = pad1d(x_small, padleft, padright)
    jax.block_until_ready(y_small)
    ref_small = jnp.pad(x_small, ((0, 0), (0, 0), (0, 0), (padleft, padright)))
    assert y_small.shape == ref_small.shape, (y_small.shape, ref_small.shape)
    assert jnp.allclose(y_small, ref_small, atol=0.0, rtol=0.0)

    # Lane-dense input (W = 256): exercises the Pallas kernel path
    # (rows = 128 -> tb = 64, grid = (2,)).
    x_wide = jax.random.normal(key, (2, 4, 16, 256), dtype=jnp.float32)
    y_wide = pad1d(x_wide, padleft, padright)
    jax.block_until_ready(y_wide)
    ref_wide = jnp.pad(x_wide, ((0, 0), (0, 0), (0, 0), (padleft, padright)))
    assert y_wide.shape == ref_wide.shape, (y_wide.shape, ref_wide.shape)
    assert jnp.allclose(y_wide, ref_wide, atol=0.0, rtol=0.0)

    print("KERNEL_OK")
</pallas_src>

<mosaic_0001>
module attributes {stable_mosaic.version = 11 : i64} {
  func.func @_pad1d_kernel(%arg0: i32, %arg1: memref<64x256xf32, #tpu.memory_space<vmem>>, %arg2: memref<64x261xf32, #tpu.memory_space<vmem>>) attributes {dimension_semantics = [#tpu.dimension_semantics<parallel>], iteration_bounds = array<i64: 2>, scalar_prefetch = 0 : i64, scratch_operands = 0 : i64, tpu.core_type = #tpu.core_type<tc>, window_params = [{transform_indices = @transform_0, window_bounds = array<i64: 64, 256>}, {transform_indices = @transform_1, window_bounds = array<i64: 64, 261>}]} {
    %c0 = arith.constant 0 : index
    %c0_0 = arith.constant 0 : index
    %0 = vector.load %arg1[%c0, %c0_0] : memref<64x256xf32, #tpu.memory_space<vmem>>, vector<64x256xf32>
    %c0_1 = arith.constant 0 : index
    %c2 = arith.constant 2 : index
    %1 = vector.load %arg2[%c0_1, %c2] : memref<64x261xf32, #tpu.memory_space<vmem>>, vector<64x256xf32>
    tpu.vector_store %arg2[%c0_1, %c2], %0 {strides = array<i32>} : memref<64x261xf32, #tpu.memory_space<vmem>>, vector<64x256xf32>,
    %cst = arith.constant 0.000000e+00 : f32
    %2 = vector.broadcast %cst : f32 to vector<64x2xf32>
    %c0_2 = arith.constant 0 : index
    %c0_3 = arith.constant 0 : index
    %3 = vector.load %arg2[%c0_2, %c0_3] : memref<64x261xf32, #tpu.memory_space<vmem>>, vector<64x2xf32>
    tpu.vector_store %arg2[%c0_2, %c0_3], %2 {strides = array<i32>} : memref<64x261xf32, #tpu.memory_space<vmem>>, vector<64x2xf32>,
    %cst_4 = arith.constant 0.000000e+00 : f32
    %4 = vector.broadcast %cst_4 : f32 to vector<64x3xf32>
    %c0_5 = arith.constant 0 : index
    %c258 = arith.constant 258 : index
    %5 = vector.load %arg2[%c0_5, %c258] : memref<64x261xf32, #tpu.memory_space<vmem>>, vector<64x3xf32>
    tpu.vector_store %arg2[%c0_5, %c258], %4 {strides = array<i32>} : memref<64x261xf32, #tpu.memory_space<vmem>>, vector<64x3xf32>,
    return
  }
  func.func @transform_0(%arg0: i32) -> (i32, i32) {
    %c0_i32 = arith.constant 0 : i32
    %c0_i32_0 = arith.constant 0 : i32
    return %arg0, %c0_i32 : i32, i32
  }
  func.func @transform_1(%arg0: i32) -> (i32, i32) {
    %c0_i32 = arith.constant 0 : i32
    %c0_i32_0 = arith.constant 0 : i32
    return %arg0, %c0_i32 : i32, i32
  }
}

</mosaic_0001>

<bundles_post_ra>
// kernel: tpu_custom_call.1
= control target key start
LH: loop header
LB: loop body
LE: loop exit
PB: predicated region body
PF: predicated region fallthrough
CT: control target
= control target key end

     0   :  { %6 = vsyncpa [#allocation3], 0  ;;  %s689_s0 = inlined_call_operand.hbm [shape: f32[128,256], index: 0, kind: input, shape index: {}]   ;;  %s690_s1 = inlined_call_operand.vmem [shape: f32[128,261], index: 1, kind: output, shape index: {}]  }
   0x1   :  { %8 = vsyncpa [#allocation3 + $0x1], 0  ;;  %s489_s6 = smov 0   ;;  %s491_s7 = smov 0  }
   0x2   :  { %s493_s8 = smov 0   ;;  %s495_s9 = smov 0  }
   0x3 LB: > { %s350_s10 = sadd.s32 4294967295, %s472_s9   ;;  %s509_s11 = sadd.s32 1, %s472_s9   ;;  %s472_s9 = sphi %s495_s9, %s699_s9   ;;  %s468_s8 = sphi %s493_s8, %s698_s8   ;;  %s464_s7 = sphi %s491_s7, %s697_s7   ;;  %s460_s6 = sphi %s489_s6, %s696_s6  }
   0x4   : > { %s18_s12 = ssub.s32 %s472_s9, %s509_s11  ;;  %s21_s13 = sadd.s32 1, %s468_s8 }
   0x5   : > { %p19_p0 = scmp.eq.s32.totalorder %s18_s12, 0  ;;  %p28_p1 = scmp.ne.s32.totalorder %s468_s8, %s464_s7 }
   0x6   : > { %p29_p2 = scmp.eq.s32.totalorder %s472_s9, 0  ;;  %p34_p3 = scmp.ne.s32.totalorder %s464_s7, %s460_s6 }
   0x7   : > { %s519_s14 = scalar_select %p19_p0, %s468_s8, %s21_s13  }
   0x8   : > { %p30_p4 = por %p29_p2, %p28_p1  ;;  %p35_p5 = scmp.eq.s32.totalorder %s350_s10, 0 }
   0x9   : > { %p373_p6 = scmp.lt.s32.totalorder %s472_s9, 2  ;;  %s84_s16 = sand.u32 1, %s468_s8  }
   0xa   : > { %p524_p7 = por %p35_p5, %p34_p3  ;;  %s354_s17 = sshll.u32 %s84_s16, 7 }
   0xb   : > { %s365_s18 = sshll.u32 %s472_s9, 11  ;;  %s88_s22 = scalar_lea.vmem [#allocation2], %s354_s17 }
   0xc   : > { %s692_s15 = scalar_select %p524_p7, 1, 0 }
   0xd   : > { %s533_s21 = scalar_lea.hbm %s689_s0, %s365_s18  ;;  %s96_s23 = sshll.u32 %s88_s22, 4  ;;  %s535_s23 = int_to_ptr.vmem [resolvable:$true] %s96_s23 }
   0xe   : > { %p537_p8 = pnand %p373_p6, %p30_p4  ;;  %s542_s25 = scalar_lea.sflag [#allocation3], %s84_s16 }
   0xf   : > { %s410_s26 = scalar_lea.hbm %s533_s21, 2048  ;;  %s415_s29 = scalar_lea.hbm %s689_s0, 4096 }
  0x10   : > { %p411_p10 = scmp.ne.s32.totalorder %s533_s21, %s410_s26  ;;  %p412_p11 = pneg %p537_p8 }
  0x11   : > { %p416_p0 = scmp.lt.s32.totalorder %s533_s21, %s689_s0  ;;  %p417_p1 = scmp.lt.s32.totalorder %s415_s29, %s410_s26 }
  0x12   : > { %p413_p12 = pnand %p412_p11, %p411_p10 }
  0x13   : > { %p418_p2 = por %p417_p1, %p416_p0 }
  0x14   : > { %p414_p13 = pneg %p413_p12 }
  0x16   : > { %p419_p3 = pnand %p418_p2, %p414_p13 }
  0x18   : > { %422 = shalt.err (!%p419_p3)
}
  0x19   : > { %s423_s3 = scalar_lea.vmem %s535_s23, 2048  ;;  %s474_s4 = smov [#allocation2]  }
  0x1a   : > { %p424_p4 = scmp.ne.s32.totalorder %s535_s23, %s423_s3  ;;  %s428_s5 = sshll.u32 %s474_s4, 4  ;;  %s429_s5 = int_to_ptr.vmem [resolvable:$false] %s428_s5 }
  0x1b   : > { %s430_s6 = scalar_lea.vmem %s429_s5, 4096  ;;  %p431_p10 = scmp.lt.s32.totalorder %s535_s23, %s429_s5 }
  0x1c   : > { %p426_p5 = pnand %p424_p4, %p412_p11  ;;  %p432_p12 = scmp.lt.s32.totalorder %s430_s6, %s423_s3 }
  0x1e   : > { %p427_p6 = pneg %p426_p5  ;;  %p433_p9 = por %p432_p12, %p431_p10 }
  0x20   : > { %p434_p7 = pnand %p433_p9, %p427_p6 }
  0x22   : > { %437 = shalt.err (!%p434_p7)
}
  0x23   : > { %s475_s12 = smov 256   ;;  %s476_s13 = smov 16  }
  0x24   : > { %372 = dma.hbm_to_vmem [thread:$0]  (!%p537_p8), %s533_s21, 2048, %s535_s23, %s542_s25, %s475_s12, %s475_s12, %s476_s13  }
  0x25   : > { %p104_p11 = scmp.lt.s32.totalorder %s472_s9, 3  ;;  %p694_p13 = scmp.ge.s32.totalorder %s472_s9, 1 }
  0x27   : > { %p105_p0 = pnand %p694_p13, %p104_p11 }
  0x28   : > { %s110_s16 = sand.u32 (!%p105_p0), 1, %s464_s7   ;;  %p695_p7 = scmp.ne.s32.totalorder (!%p105_p0), %s692_s15, 0 }
  0x29   : > { %108 = sbr.rel (%p105_p0) target bundleno = 195 (0xc3), region = 24  ;;  %s359_s17 = sshll.u32 (!%p105_p0), %s110_s16, 7 }
  0x2a   : > { %s111_s18 = scalar_lea.sflag (!%p105_p0), [#allocation3], %s110_s16  ;;  %s567_s19 = scalar_lea.vmem (!%p105_p0), [#allocation2], %s359_s17 }
  0x2e   : > { %455 = dma.done.wait (%p695_p7), %s111_s18, 2048  }
  0x2f   : > { %457 = vsyncadd (%p695_p7), %s111_s18, 4294965248  ;;  %v144_v0 = vld [vmem:[%s567_s19 + $0x10] sm:$0xff]  ;;  %v142_v1 = vld [vmem:[%s567_s19] sm:$0xff]  ;;  %s477_s20 = smov 2   ;;  %s360_s15 = sshll.u32 %s350_s10, 3  ;;  %vm239_vm0 = vcmask 1047568  }
  0x30   : > { %178 = vrot.lane.b32.xlu1 %v144_v0, %s477_s20  ;;  %174 = vrot.lane.b32.xlu0 %v142_v1, %s477_s20  ;;  %v145_v2 = vld [vmem:[%s567_s19 + $0x18] sm:$0xff]  ;;  %v143_v3 = vld [vmem:[%s567_s19 + $0x8] sm:$0xff]  ;;  %p136_p8 = scmp.lt.s32.totalorder %s360_s15, 15  ;;  %vm206_vm1 = vcmask 15360   ;;  %v478_v18 = vmov 0.0   ;;  %vm272_vm2 = vcmask 39952  }
  0x31   : > { %v147_v4 = vld [vmem:[%s567_s19 + $0x28] sm:$0xff]  ;;  %v146_v5 = vld [vmem:[%s567_s19 + $0x20] sm:$0xff]  ;;  %v149_v6 = vld [vmem:[%s567_s19 + $0x38] sm:$0xff] }
  0x32   : > { %v148_v7 = vld [vmem:[%s567_s19 + $0x30] sm:$0xff]  ;;  %v151_v8 = vld [vmem:[%s567_s19 + $0x48] sm:$0xff]  ;;  %v150_v9 = vld [vmem:[%s567_s19 + $0x40] sm:$0xff]  ;;  %s701_s15 = smov (!%p136_p8, %s360_s15), 15 }
  0x33   : > { %v153_v10 = vld [vmem:[%s567_s19 + $0x58] sm:$0xff]  ;;  %v152_v11 = vld [vmem:[%s567_s19 + $0x50] sm:$0xff]  ;;  %v155_v12 = vld [vmem:[%s567_s19 + $0x68] sm:$0xff]  ;;  %s366_s21 = smul.u32 24, %s701_s15 }
  0x34   : > { %180 = vrot.lane.b32.xlu1 %v145_v2, %s477_s20  ;;  %176 = vrot.lane.b32.xlu0 %v143_v3, %s477_s20  ;;  %v154_v13 = vld [vmem:[%s567_s19 + $0x60] sm:$0xff]  ;;  %v157_v14 = vld [vmem:[%s567_s19 + $0x78] sm:$0xff] }
  0x35   : > { %v156_v15 = vld [vmem:[%s567_s19 + $0x70] sm:$0xff]  ;;  %s594_s24 = scalar_lea.vmem %s690_s1, %s366_s21 }
  0x38   : > { %184 = vrot.lane.b32.xlu1 %v147_v4, %s477_s20  ;;  %182 = vrot.lane.b32.xlu0 %v146_v5, %s477_s20 }
  0x3c   : > { %188 = vrot.lane.b32.xlu1 %v149_v6, %s477_s20  ;;  %186 = vrot.lane.b32.xlu0 %v148_v7, %s477_s20 }
  0x40   : > { %192 = vrot.lane.b32.xlu1 %v151_v8, %s477_s20  ;;  %190 = vrot.lane.b32.xlu0 %v150_v9, %s477_s20 }
  0x44   : > { %196 = vrot.lane.b32.xlu1 %v153_v10, %s477_s20  ;;  %194 = vrot.lane.b32.xlu0 %v152_v11, %s477_s20 }
  0x48   : > { %200 = vrot.lane.b32.xlu1 %v155_v12, %s477_s20  ;;  %198 = vrot.lane.b32.xlu0 %v154_v13, %s477_s20 }
  0x4c   : > { %204 = vrot.lane.b32.xlu1 %v157_v14, %s477_s20  ;;  %202 = vrot.lane.b32.xlu0 %v156_v15, %s477_s20 }
  0xa2   : > { %v179_v16 = vpop.permute.xlu1 %178  ;;  %v175_v17 = vpop.permute.xlu0 %174 }
  0xa3   : > { %243 = vst.msk [vmem:[%s594_s24 + $0x18] sm:$0xff] %vm239_vm0, %v179_v16  ;;  %240 = vst.msk [vmem:[%s594_s24] sm:$0xff] %vm239_vm0, %v175_v17 }
  0xa4   : > { %265 = vst.msk [vmem:[%s594_s24 + $0x18] sm:$0xff] %vm206_vm1, %v478_v18  ;;  %264 = vst.msk [vmem:[%s594_s24] sm:$0xff] %vm206_vm1, %v478_v18 }
  0xa6   : > { %v181_v19 = vpop.permute.xlu1 %180  ;;  %v177_v20 = vpop.permute.xlu0 %176 }
  0xa7   : > { %v208_v21 = vsel %vm206_vm1, %v179_v16, %v181_v19  ;;  %245 = vst.msk [vmem:[%s594_s24 + $0x28] sm:$0xff] %vm206_vm1, %v181_v19  ;;  %v207_v22 = vsel %vm206_vm1, %v175_v17, %v177_v20  ;;  %242 = vst.msk [vmem:[%s594_s24 + $0x10] sm:$0xff] %vm206_vm1, %v177_v20 }
  0xa8   : > { %244 = vst [vmem:[%s594_s24 + $0x20] sm:$0xff] %v208_v21  ;;  %274 = vst.msk [vmem:[%s594_s24 + $0x28] sm:$0xff] %vm272_vm2, %v478_v18 }
  0xa9   : > { %241 = vst [vmem:[%s594_s24 + $0x8] sm:$0xff] %v207_v22  ;;  %273 = vst.msk [vmem:[%s594_s24 + $0x10] sm:$0xff] %vm272_vm2, %v478_v18 }
  0xaa   : > { %v185_v23 = vpop.permute.xlu1 %184  ;;  %v183_v24 = vpop.permute.xlu0 %182 }
  0xab   : > { %248 = vst.msk [vmem:[%s594_s24 + $0x40] sm:$0xff] %vm206_vm1, %v185_v23  ;;  %v209_v25 = vsel %vm206_vm1, %v183_v24, %v185_v23 }
  0xac   : > { %246 = vst.msk [vmem:[%s594_s24 + $0x30] sm:$0xff] %vm239_vm0, %v183_v24  ;;  %247 = vst [vmem:[%s594_s24 + $0x38] sm:$0xff] %v209_v25 }
  0xad   : > { %275 = vst.msk [vmem:[%s594_s24 + $0x40] sm:$0xff] %vm272_vm2, %v478_v18 }
  0xae   : > { %266 = vst.msk [vmem:[%s594_s24 + $0x30] sm:$0xff] %vm206_vm1, %v478_v18  ;;  %v189_v26 = vpop.permute.xlu1 %188  ;;  %v187_v27 = vpop.permute.xlu0 %186 }
  0xaf   : > { %251 = vst.msk [vmem:[%s594_s24 + $0x58] sm:$0xff] %vm206_vm1, %v189_v26  ;;  %v210_v28 = vsel %vm206_vm1, %v187_v27, %v189_v26 }
  0xb0   : > { %249 = vst.msk [vmem:[%s594_s24 + $0x48] sm:$0xff] %vm239_vm0, %v187_v27  ;;  %250 = vst [vmem:[%s594_s24 + $0x50] sm:$0xff] %v210_v28 }
  0xb1   : > { %276 = vst.msk [vmem:[%s594_s24 + $0x58] sm:$0xff] %vm272_vm2, %v478_v18 }
  0xb2   : > { %267 = vst.msk [vmem:[%s594_s24 + $0x48] sm:$0xff] %vm206_vm1, %v478_v18  ;;  %v193_v29 = vpop.permute.xlu1 %192  ;;  %v191_v30 = vpop.permute.xlu0 %190 }
  0xb3   : > { %254 = vst.msk [vmem:[%s594_s24 + $0x70] sm:$0xff] %vm206_vm1, %v193_v29  ;;  %v211_v31 = vsel %vm206_vm1, %v191_v30, %v193_v29 }
  0xb4   : > { %252 = vst.msk [vmem:[%s594_s24 + $0x60] sm:$0xff] %vm239_vm0, %v191_v30  ;;  %253 = vst [vmem:[%s594_s24 + $0x68] sm:$0xff] %v211_v31 }
  0xb5   : > { %277 = vst.msk [vmem:[%s594_s24 + $0x70] sm:$0xff] %vm272_vm2, %v478_v18 }
  0xb6   : > { %268 = vst.msk [vmem:[%s594_s24 + $0x60] sm:$0xff] %vm206_vm1, %v478_v18  ;;  %v197_v32 = vpop.permute.xlu1 %196  ;;  %v195_v33 = vpop.permute.xlu0 %194 }
  0xb7   : > { %257 = vst.msk [vmem:[%s594_s24 + $0x88] sm:$0xff] %vm206_vm1, %v197_v32  ;;  %v212_v34 = vsel %vm206_vm1, %v195_v33, %v197_v32 }
  0xb8   : > { %255 = vst.msk [vmem:[%s594_s24 + $0x78] sm:$0xff] %vm239_vm0, %v195_v33  ;;  %256 = vst [vmem:[%s594_s24 + $0x80] sm:$0xff] %v212_v34 }
  0xb9   : > { %278 = vst.msk [vmem:[%s594_s24 + $0x88] sm:$0xff] %vm272_vm2, %v478_v18 }
  0xba   : > { %269 = vst.msk [vmem:[%s594_s24 + $0x78] sm:$0xff] %vm206_vm1, %v478_v18  ;;  %v201_v35 = vpop.permute.xlu1 %200  ;;  %v199_v36 = vpop.permute.xlu0 %198 }
  0xbb   : > { %260 = vst.msk [vmem:[%s594_s24 + $0xa0] sm:$0xff] %vm206_vm1, %v201_v35  ;;  %v213_v37 = vsel %vm206_vm1, %v199_v36, %v201_v35 }
  0xbc   : > { %258 = vst.msk [vmem:[%s594_s24 + $0x90] sm:$0xff] %vm239_vm0, %v199_v36  ;;  %259 = vst [vmem:[%s594_s24 + $0x98] sm:$0xff] %v213_v37 }
  0xbd   : > { %279 = vst.msk [vmem:[%s594_s24 + $0xa0] sm:$0xff] %vm272_vm2, %v478_v18 }
  0xbe   : > { %270 = vst.msk [vmem:[%s594_s24 + $0x90] sm:$0xff] %vm206_vm1, %v478_v18  ;;  %v205_v38 = vpop.permute.xlu1 %204  ;;  %v203_v39 = vpop.permute.xlu0 %202 }
  0xbf   : > { %263 = vst.msk [vmem:[%s594_s24 + $0xb8] sm:$0xff] %vm206_vm1, %v205_v38  ;;  %v214_v40 = vsel %vm206_vm1, %v203_v39, %v205_v38 }
  0xc0   : > { %261 = vst.msk [vmem:[%s594_s24 + $0xa8] sm:$0xff] %vm239_vm0, %v203_v39  ;;  %262 = vst [vmem:[%s594_s24 + $0xb0] sm:$0xff] %v214_v40 }
  0xc1   : > { %280 = vst.msk [vmem:[%s594_s24 + $0xb8] sm:$0xff] %vm272_vm2, %v478_v18 }
  0xc2   : > { %271 = vst.msk [vmem:[%s594_s24 + $0xa8] sm:$0xff] %vm206_vm1, %v478_v18 }
  0xc3 PF: > { %p11_p9 = scmp.ge.s32.totalorder %s509_s11, 4   ;;  %s696_s6 = smov %s464_s7 }
  0xc4   : > { %s697_s7 = smov %s468_s8  ;;  %s698_s8 = smov %s519_s14 }
  0xc5   : > { %s699_s9 = smov %s509_s11  ;;  %13 = sbr.rel (!%p11_p9) target bundleno = 3 (0x3), region = 64 }
  0xca   :  { %305 = vsyncpa [#allocation3], 1 }
  0xcb   :  { %307 = vsyncpa [#allocation3 + $0x1], 1 }

</bundles_post_ra>
